<compile_context>
chip_gen: v5e
topology: v5e:2x2
jax: 0.10.0
libtpu: 0.0.40
codegen_flags: <defaults>
</compile_context>

<pallas_src>
import jax
import jax.numpy as jnp
from jax.experimental import pallas as pl
from jax.experimental.pallas import tpu as pltpu

LANE = 128


def _round_up(n, m):
    return ((n + m - 1) // m) * m


def _mlp_value_kernel(x_ref, w1_ref, b1_ref, w2_ref, b2_ref, w3_ref, b3_ref, o_ref):
    # x_ref: (TILE_B, DP); w1: (DP, HP); w2: (HP, HP); w3: (1, HP) row;
    # b1/b2: (1, HP); b3: (1, 1) scalar in SMEM; o_ref: (1, TILE_B) lane-dense.
    x = x_ref[...]

    h1 = jnp.dot(x, w1_ref[...], preferred_element_type=jnp.float32) + b1_ref[...]
    h1 = jnp.maximum(h1, 0.0)                                   # ReLU (fp32 VPU)

    h2 = jnp.dot(h1, w2_ref[...], preferred_element_type=jnp.float32) + b2_ref[...]
    h2 = jnp.maximum(h2, 0.0)                                   # ReLU

    # Value head: single output column -> VPU multiply + lane reduce, no MXU.
    v = jnp.sum(h2 * w3_ref[...], axis=-1) + b3_ref[0, 0]       # (TILE_B,)
    o_ref[...] = v.reshape(1, -1).astype(o_ref.dtype)           # (1, TILE_B)


def centralized_value_forward(x, padded_params, *, tile_b=1024):
    """Forward pass of the centralized critic.

    x             : (B, total_obs_dim) float32 (unpadded)
    padded_params : output of pad_params() -- lane-padded weights
    returns       : (B, 1) float32
    """
    B, D = x.shape
    w1 = padded_params["w1"]
    DP, HP = w1.shape

    # Tile sizing: multiple of 128 (lane-dense out block), clamped for small B.
    tile_b = max(LANE, min(_round_up(tile_b, LANE), _round_up(B, LANE)))
    Bp = _round_up(B, tile_b)
    n_tiles = Bp // tile_b

    # Zero-pad batch and feature dims outside the kernel (plain JAX).
    x_p = jnp.zeros((Bp, DP), jnp.float32).at[:B, :D].set(x.astype(jnp.float32))

    resident = lambda i: (0, 0)  # weights/biases: same block every step -> stay in VMEM

    out = pl.pallas_call(
        _mlp_value_kernel,
        out_shape=jax.ShapeDtypeStruct((1, Bp), jnp.float32),
        grid=(n_tiles,),
        in_specs=[
            pl.BlockSpec((tile_b, DP), lambda i: (i, 0)),      # x tiles (pipelined)
            pl.BlockSpec((DP, HP), resident),                  # w1
            pl.BlockSpec((1, HP), resident),                   # b1
            pl.BlockSpec((HP, HP), resident),                  # w2
            pl.BlockSpec((1, HP), resident),                   # b2
            pl.BlockSpec((1, HP), resident),                   # w3 (row)
            pl.BlockSpec(memory_space=pltpu.MemorySpace.SMEM),  # b3 scalar
        ],
        out_specs=pl.BlockSpec((1, tile_b), lambda i: (0, i)),  # lane-dense output
        compiler_params=pltpu.CompilerParams(
            dimension_semantics=("parallel",),
        ),
        cost_estimate=pl.CostEstimate(
            flops=2 * Bp * (DP * HP + HP * HP + HP),
            bytes_accessed=(Bp * DP + DP * HP + HP * HP + 3 * HP + 1 + Bp) * 4,
            transcendentals=0,
        ),
    )(x_p, padded_params["w1"], padded_params["b1"], padded_params["w2"],
      padded_params["b2"], padded_params["w3"], padded_params["b3"])

    return out[0, :B].reshape(B, 1)


def init_params(key, total_obs_dim, hidden_dim):
    """PyTorch nn.Linear default init: U(-1/sqrt(fan_in), 1/sqrt(fan_in))."""
    ks = jax.random.split(key, 6)

    def linear(kw, kb, fan_in, fan_out):
        bound = 1.0 / jnp.sqrt(jnp.float32(fan_in))
        w = jax.random.uniform(kw, (fan_in, fan_out), jnp.float32, -bound, bound)
        b = jax.random.uniform(kb, (1, fan_out), jnp.float32, -bound, bound)
        return w, b

    w1, b1 = linear(ks[0], ks[1], total_obs_dim, hidden_dim)
    w2, b2 = linear(ks[2], ks[3], hidden_dim, hidden_dim)
    w3, b3 = linear(ks[4], ks[5], hidden_dim, 1)
    return {"w1": w1, "b1": b1, "w2": w2, "b2": b2, "w3": w3, "b3": b3}


def pad_params(p, total_obs_dim, hidden_dim):
    """Zero-pad feature dims up to 128 lanes so all kernel operands are dense.

    Zero rows/cols guarantee padded lanes of h1/h2 stay exactly 0 through the
    ReLUs and contribute nothing to the final reduction.
    """
    DP = _round_up(total_obs_dim, LANE)
    HP = _round_up(hidden_dim, LANE)
    w1 = jnp.zeros((DP, HP), jnp.float32).at[:total_obs_dim, :hidden_dim].set(p["w1"])
    b1 = jnp.zeros((1, HP), jnp.float32).at[:, :hidden_dim].set(p["b1"])
    w2 = jnp.zeros((HP, HP), jnp.float32).at[:hidden_dim, :hidden_dim].set(p["w2"])
    b2 = jnp.zeros((1, HP), jnp.float32).at[:, :hidden_dim].set(p["b2"])
    w3 = jnp.zeros((1, HP), jnp.float32).at[0, :hidden_dim].set(p["w3"][:, 0])
    b3 = p["b3"].reshape(1, 1).astype(jnp.float32)
    return {"w1": w1, "b1": b1, "w2": w2, "b2": b2, "w3": w3, "b3": b3}


def reference_forward(x, p):
    h1 = jnp.maximum(x @ p["w1"] + p["b1"], 0.0)
    h2 = jnp.maximum(h1 @ p["w2"] + p["b2"], 0.0)
    return h2 @ p["w3"] + p["b3"]


if __name__ == "__main__":
    total_obs_dim = 16   # e.g. 2 agents x 8-dim obs, concatenated for the centralized critic
    hidden_dim = 32
    batch = 8

    key = jax.random.PRNGKey(0)
    k_x, k_p = jax.random.split(key)
    x = jax.random.normal(k_x, (batch, total_obs_dim), jnp.float32)

    params = init_params(k_p, total_obs_dim, hidden_dim)
    padded = pad_params(params, total_obs_dim, hidden_dim)

    out = centralized_value_forward(x, padded)
    out = jax.block_until_ready(out)

    ref = reference_forward(x, params)
    assert out.shape == (batch, 1)
    assert jnp.allclose(out, ref, atol=1e-5, rtol=1e-5), "Pallas kernel mismatch vs reference"

    print("KERNEL_OK")
</pallas_src>

<mosaic_0001>
module attributes {stable_mosaic.version = 11 : i64} {
  func.func @_mlp_value_kernel(%arg0: i32, %arg1: memref<128x128xf32, #tpu.memory_space<vmem>>, %arg2: memref<128x128xf32, #tpu.memory_space<vmem>>, %arg3: memref<1x128xf32, #tpu.memory_space<vmem>>, %arg4: memref<128x128xf32, #tpu.memory_space<vmem>>, %arg5: memref<1x128xf32, #tpu.memory_space<vmem>>, %arg6: memref<1x128xf32, #tpu.memory_space<vmem>>, %arg7: memref<1x1xf32, #tpu.memory_space<smem>>, %arg8: memref<1x128xf32, #tpu.memory_space<vmem>>) attributes {dimension_semantics = [#tpu.dimension_semantics<parallel>], iteration_bounds = array<i64: 1>, scalar_prefetch = 0 : i64, scratch_operands = 0 : i64, tpu.core_type = #tpu.core_type<tc>, window_params = [{transform_indices = @transform_0, window_bounds = array<i64: 128, 128>}, {pipeline_mode = #tpu.pipeline_mode<synchronous>, transform_indices = @transform_1, window_bounds = array<i64: 128, 128>}, {pipeline_mode = #tpu.pipeline_mode<synchronous>, transform_indices = @transform_2, window_bounds = array<i64: 1, 128>}, {pipeline_mode = #tpu.pipeline_mode<synchronous>, transform_indices = @transform_3, window_bounds = array<i64: 128, 128>}, {pipeline_mode = #tpu.pipeline_mode<synchronous>, transform_indices = @transform_4, window_bounds = array<i64: 1, 128>}, {pipeline_mode = #tpu.pipeline_mode<synchronous>, transform_indices = @transform_5, window_bounds = array<i64: 1, 128>}, {transform_indices = @transform_6, window_bounds = array<i64: 1, 1>}, {transform_indices = @transform_7, window_bounds = array<i64: 1, 128>}]} {
    %c0 = arith.constant 0 : index
    %c0_0 = arith.constant 0 : index
    %0 = vector.load %arg1[%c0, %c0_0] : memref<128x128xf32, #tpu.memory_space<vmem>>, vector<128x128xf32>
    %c0_1 = arith.constant 0 : index
    %c0_2 = arith.constant 0 : index
    %1 = vector.load %arg2[%c0_1, %c0_2] : memref<128x128xf32, #tpu.memory_space<vmem>>, vector<128x128xf32>
    %cst = arith.constant dense<0.000000e+00> : vector<128x128xf32>
    %2 = tpu.matmul %0, %1, %cst {dimension_numbers = #tpu.dot_dimension_numbers<[1], [0], [0], [1], [0, 0, 1, 1], [], []>} : vector<128x128xf32>, vector<128x128xf32>, vector<128x128xf32> -> vector<128x128xf32>
    %c0_3 = arith.constant 0 : index
    %c0_4 = arith.constant 0 : index
    %3 = vector.load %arg3[%c0_3, %c0_4] : memref<1x128xf32, #tpu.memory_space<vmem>>, vector<1x128xf32>
    %4 = vector.broadcast %3 : vector<1x128xf32> to vector<128x128xf32>
    %5 = arith.addf %2, %4 : vector<128x128xf32>
    %cst_5 = arith.constant 0.000000e+00 : f32
    %6 = vector.broadcast %cst_5 : f32 to vector<128x128xf32>
    %7 = arith.maximumf %5, %6 : vector<128x128xf32>
    %c0_6 = arith.constant 0 : index
    %c0_7 = arith.constant 0 : index
    %8 = vector.load %arg4[%c0_6, %c0_7] : memref<128x128xf32, #tpu.memory_space<vmem>>, vector<128x128xf32>
    %cst_8 = arith.constant dense<0.000000e+00> : vector<128x128xf32>
    %9 = tpu.matmul %7, %8, %cst_8 {dimension_numbers = #tpu.dot_dimension_numbers<[1], [0], [0], [1], [0, 0, 1, 1], [], []>} : vector<128x128xf32>, vector<128x128xf32>, vector<128x128xf32> -> vector<128x128xf32>
    %c0_9 = arith.constant 0 : index
    %c0_10 = arith.constant 0 : index
    %10 = vector.load %arg5[%c0_9, %c0_10] : memref<1x128xf32, #tpu.memory_space<vmem>>, vector<1x128xf32>
    %11 = vector.broadcast %10 : vector<1x128xf32> to vector<128x128xf32>
    %12 = arith.addf %9, %11 : vector<128x128xf32>
    %cst_11 = arith.constant 0.000000e+00 : f32
    %13 = vector.broadcast %cst_11 : f32 to vector<128x128xf32>
    %14 = arith.maximumf %12, %13 : vector<128x128xf32>
    %c0_12 = arith.constant 0 : index
    %c0_13 = arith.constant 0 : index
    %15 = vector.load %arg6[%c0_12, %c0_13] : memref<1x128xf32, #tpu.memory_space<vmem>>, vector<1x128xf32>
    %16 = vector.broadcast %15 : vector<1x128xf32> to vector<128x128xf32>
    %17 = arith.mulf %14, %16 : vector<128x128xf32>
    %cst_14 = arith.constant dense<0.000000e+00> : vector<128xf32>
    %18 = vector.multi_reduction <add>, %17, %cst_14 [1] : vector<128x128xf32> to vector<128xf32>
    %c0_15 = arith.constant 0 : index
    %c0_16 = arith.constant 0 : index
    %19 = memref.load %arg7[%c0_15, %c0_16] : memref<1x1xf32, #tpu.memory_space<smem>>
    %20 = vector.broadcast %19 : f32 to vector<128xf32>
    %21 = arith.addf %18, %20 : vector<128xf32>
    %22 = vector.shape_cast %21 : vector<128xf32> to vector<1x128xf32>
    %c0_17 = arith.constant 0 : index
    %c0_18 = arith.constant 0 : index
    %23 = vector.load %arg8[%c0_17, %c0_18] : memref<1x128xf32, #tpu.memory_space<vmem>>, vector<1x128xf32>
    tpu.vector_store %arg8[%c0_17, %c0_18], %22 {strides = array<i32>} : memref<1x128xf32, #tpu.memory_space<vmem>>, vector<1x128xf32>,
    return
  }
  func.func @transform_0(%arg0: i32) -> (i32, i32) {
    %c0_i32 = arith.constant 0 : i32
    %c0_i32_0 = arith.constant 0 : i32
    return %arg0, %c0_i32 : i32, i32
  }
  func.func @transform_1(%arg0: i32) -> (i32, i32) {
    %c0_i32 = arith.constant 0 : i32
    %c0_i32_0 = arith.constant 0 : i32
    %c0_i32_1 = arith.constant 0 : i32
    return %c0_i32, %c0_i32_0 : i32, i32
  }
  func.func @transform_2(%arg0: i32) -> (i32, i32) {
    %c0_i32 = arith.constant 0 : i32
    %c0_i32_0 = arith.constant 0 : i32
    %c0_i32_1 = arith.constant 0 : i32
    return %c0_i32, %c0_i32_0 : i32, i32
  }
  func.func @transform_3(%arg0: i32) -> (i32, i32) {
    %c0_i32 = arith.constant 0 : i32
    %c0_i32_0 = arith.constant 0 : i32
    %c0_i32_1 = arith.constant 0 : i32
    return %c0_i32, %c0_i32_0 : i32, i32
  }
  func.func @transform_4(%arg0: i32) -> (i32, i32) {
    %c0_i32 = arith.constant 0 : i32
    %c0_i32_0 = arith.constant 0 : i32
    %c0_i32_1 = arith.constant 0 : i32
    return %c0_i32, %c0_i32_0 : i32, i32
  }
  func.func @transform_5(%arg0: i32) -> (i32, i32) {
    %c0_i32 = arith.constant 0 : i32
    %c0_i32_0 = arith.constant 0 : i32
    %c0_i32_1 = arith.constant 0 : i32
    return %c0_i32, %c0_i32_0 : i32, i32
  }
  func.func @transform_6(%arg0: i32) -> (i32, i32) {
    %c0_i32 = arith.constant 0 : i32
    %c0_i32_0 = arith.constant 0 : i32
    %c0_i32_1 = arith.constant 0 : i32
    return %c0_i32, %c0_i32_0 : i32, i32
  }
  func.func @transform_7(%arg0: i32) -> (i32, i32) {
    %c0_i32 = arith.constant 0 : i32
    %c0_i32_0 = arith.constant 0 : i32
    return %c0_i32, %arg0 : i32, i32
  }
}

</mosaic_0001>

<bundles_post_ra>
// kernel: tpu_custom_call.1
= control target key start
LH: loop header
LB: loop body
LE: loop exit
PB: predicated region body
PF: predicated region fallthrough
CT: control target
= control target key end

     0   :  { %13 = vsyncpa [#allocation4], 0  ;;  %s748_s0 = inlined_call_operand.hbm [shape: f32[128,128], index: 0, kind: input, shape index: {}]   ;;  %s749_s1 = inlined_call_operand.hbm [shape: f32[128,128], index: 1, kind: input, shape index: {}]   ;;  %s750_s2 = inlined_call_operand.vmem [shape: f32[1,128], index: 2, kind: input, shape index: {}]   ;;  %s751_s3 = inlined_call_operand.hbm [shape: f32[128,128], index: 3, kind: input, shape index: {}]   ;;  %s752_s4 = inlined_call_operand.vmem [shape: f32[1,128], index: 4, kind: input, shape index: {}]   ;;  %s753_s5 = inlined_call_operand.vmem [shape: f32[1,128], index: 5, kind: input, shape index: {}]   ;;  %s754_s6 = inlined_call_operand.<no memory space> [shape: f32[1,1], index: 6, kind: input, shape index: {}]   ;;  %s755_s7 = inlined_call_operand.hbm [shape: f32[1,128], index: 7, kind: output, shape index: {}]  }
   0x1   :  { %14 = vsyncpa [#allocation7], 0 }
   0x2   :  { %15 = vsyncpa [#allocation5], 0  ;;  %s33_s26 = sshll.u32 %s749_s1, 4  ;;  %s605_s27 = smov [#allocation6]   ;;  %s34_s26 = int_to_ptr.hbm [resolvable:$true] %s33_s26 }
   0x3   :  { %s35_s28 = sshll.u32 %s605_s27, 4  ;;  %s20_s8 = sshll.u32 %s748_s0, 4  ;;  %s36_s28 = int_to_ptr.vmem [resolvable:$true] %s35_s28  ;;  %s21_s8 = int_to_ptr.hbm [resolvable:$true] %s20_s8 }
   0x4   :  { %s606_s9 = smov 128   ;;  %s607_s10 = smov 8  }
   0x5   :  { %41 = dma.hbm_to_vmem [thread:$0]  %s34_s26, 2048, %s36_s28, [#allocation7], %s606_s9, %s606_s9, %s607_s10  }
   0x6   :  { %s608_s11 = smov [#allocation3]   ;;  %s48_s15 = sshll.u32 %s751_s3, 4  ;;  %s49_s15 = int_to_ptr.hbm [resolvable:$true] %s48_s15 }
   0x7   :  { %s22_s12 = sshll.u32 %s608_s11, 4  ;;  %s609_s1 = smov [#allocation8]   ;;  %s23_s12 = int_to_ptr.vmem [resolvable:$true] %s22_s12 }
   0x8   :  { %28 = dma.hbm_to_vmem [thread:$0]  %s21_s8, 2048, %s23_s12, [#allocation4], %s606_s9, %s606_s9, %s607_s10  }
   0x9   :  { %s50_s16 = sshll.u32 %s609_s1, 4  ;;  %s51_s16 = int_to_ptr.vmem [resolvable:$true] %s50_s16 }
   0xa   :  { %56 = dma.hbm_to_vmem [thread:$0]  %s49_s15, 2048, %s51_s16, [#allocation7], %s606_s9, %s606_s9, %s607_s10  }
   0xb   :  { %599 = dma.done.wait [#allocation4], 2048  }
   0xc   :  { %600 = vsyncadd [#allocation4], 4294965248 }
   0xd   :  { %601 = dma.done.wait [#allocation7], 4096  }
   0xe   :  { %602 = vsyncadd [#allocation7], 4294963200  ;;  %v106_v0 = vld [vmem:[#allocation6 + $0x78] sm:$0xff]  ;;  %v105_v1 = vld [vmem:[#allocation6 + $0x70] sm:$0xff]  ;;  %vm384_vm0 = vcmask 130112   ;;  %vm388_vm1 = vcmask 195712  }
   0xf   :  { %111 = vmatpush.msra.mxu0 %v106_v0  ;;  %462 = vmatpush.msra.mxu2 %v106_v0  ;;  %v104_v2 = vld [vmem:[#allocation6 + $0x68] sm:$0xff]  ;;  %v103_v3 = vld [vmem:[#allocation6 + $0x60] sm:$0xff]  ;;  %v102_v4 = vld [vmem:[#allocation6 + $0x58] sm:$0xff]  ;;  %vm392_vm2 = vcmask 261312   ;;  %vm396_vm3 = vcmask 326912   ;;  %vm400_vm4 = vcmask 392512  }
  0x10   :  { %v101_v5 = vld [vmem:[#allocation6 + $0x50] sm:$0xff]  ;;  %v100_v6 = vld [vmem:[#allocation6 + $0x48] sm:$0xff]  ;;  %v99_v7 = vld [vmem:[#allocation6 + $0x40] sm:$0xff]  ;;  %vm404_vm5 = vcmask 458112   ;;  %vm408_vm6 = vcmask 523712   ;;  %vm412_vm7 = vcmask 589312  }
  0x11   :  { %112 = vmatpush.msra.mxu0 %v105_v1  ;;  %463 = vmatpush.msra.mxu2 %v105_v1  ;;  %v98_v8 = vld [vmem:[#allocation6 + $0x38] sm:$0xff]  ;;  %v97_v9 = vld [vmem:[#allocation6 + $0x30] sm:$0xff]  ;;  %v96_v10 = vld [vmem:[#allocation6 + $0x28] sm:$0xff]  ;;  %vm416_vm8 = vcmask 654912   ;;  %vm420_vm9 = vcmask 720512   ;;  %vm424_vm10 = vcmask 786112  }
  0x12   :  { %v95_v11 = vld [vmem:[#allocation6 + $0x20] sm:$0xff]  ;;  %v94_v12 = vld [vmem:[#allocation6 + $0x18] sm:$0xff]  ;;  %v93_v13 = vld [vmem:[#allocation6 + $0x10] sm:$0xff]  ;;  %vm428_vm11 = vcmask 851712   ;;  %vm432_vm12 = vcmask 917312   ;;  %vm436_vm13 = vcmask 982912  }
  0x13   :  { %113 = vmatpush.msra.mxu0 %v104_v2  ;;  %464 = vmatpush.msra.mxu2 %v104_v2  ;;  %v92_v14 = vld [vmem:[#allocation6 + $0x8] sm:$0xff]  ;;  %v91_v15 = vld [vmem:[#allocation6] sm:$0xff]  ;;  %v77_v20 = vld [vmem:[#allocation3 + $0x10] sm:$0xff]  ;;  %s451_s23 = sshll.u32 %s755_s7, 4  ;;  %vm440_vm14 = vcmask 1048512   ;;  %s452_s23 = int_to_ptr.hbm [resolvable:$true] %s451_s23 }
  0x14   :  { %v75_v16 = vld [vmem:[#allocation3] sm:$0xff]  ;;  %v76_v18 = vld [vmem:[#allocation3 + $0x8] sm:$0xff]  ;;  %v85_v21 = vld [vmem:[#allocation3 + $0x50] sm:$0xff] }
  0x15   :  { %114 = vmatpush.msra.mxu0 %v103_v3  ;;  %465 = vmatpush.msra.mxu2 %v103_v3  ;;  %v83_v17 = vld [vmem:[#allocation3 + $0x40] sm:$0xff]  ;;  %v84_v19 = vld [vmem:[#allocation3 + $0x48] sm:$0xff]  ;;  %v78_v22 = vld [vmem:[#allocation3 + $0x18] sm:$0xff] }
  0x16   :  { %v86_v23 = vld [vmem:[#allocation3 + $0x58] sm:$0xff]  ;;  %v206_v25 = vld [vmem:[#allocation8 + $0x70] sm:$0xff]  ;;  %v205_v26 = vld [vmem:[#allocation8 + $0x68] sm:$0xff] }
  0x17   :  { %115 = vmatpush.msra.mxu0 %v102_v4  ;;  %466 = vmatpush.msra.mxu2 %v102_v4  ;;  %v207_v24 = vld [vmem:[#allocation8 + $0x78] sm:$0xff]  ;;  %v204_v27 = vld [vmem:[#allocation8 + $0x60] sm:$0xff]  ;;  %v202_v31 = vld [vmem:[#allocation8 + $0x50] sm:$0xff] }
  0x18   :  { %212 = vmatpush.msra.mxu1 %v207_v24  ;;  %478 = vmatpush.msra.mxu3 %v207_v24  ;;  %v79_v28 = vld [vmem:[#allocation3 + $0x20] sm:$0xff]  ;;  %v203_v30 = vld [vmem:[#allocation8 + $0x58] sm:$0xff]  ;;  %v201_v32 = vld [vmem:[#allocation8 + $0x48] sm:$0xff] }
  0x19   :  { %116 = vmatpush.msra.mxu0 %v101_v5  ;;  %467 = vmatpush.msra.mxu2 %v101_v5  ;;  %v87_v29 = vld [vmem:[#allocation3 + $0x60] sm:$0xff]  ;;  %v80_v34 = vld [vmem:[#allocation3 + $0x28] sm:$0xff]  ;;  %v199_v36 = vld [vmem:[#allocation8 + $0x38] sm:$0xff] }
  0x1a   :  { %213 = vmatpush.msra.mxu1 %v206_v25  ;;  %479 = vmatpush.msra.mxu3 %v206_v25  ;;  %v200_v33 = vld [vmem:[#allocation8 + $0x40] sm:$0xff]  ;;  %v88_v35 = vld [vmem:[#allocation3 + $0x68] sm:$0xff]  ;;  %v198_v37 = vld [vmem:[#allocation8 + $0x30] sm:$0xff] }
  0x1b   :  { %117 = vmatpush.msra.mxu0 %v100_v6  ;;  %468 = vmatpush.msra.mxu2 %v100_v6  ;;  %v197_v38 = vld [vmem:[#allocation8 + $0x28] sm:$0xff]  ;;  %v196_v39 = vld [vmem:[#allocation8 + $0x20] sm:$0xff]  ;;  %v81_v40 = vld [vmem:[#allocation3 + $0x30] sm:$0xff] }
  0x1c   :  { %214 = vmatpush.msra.mxu1 %v205_v26  ;;  %480 = vmatpush.msra.mxu3 %v205_v26  ;;  %v89_v41 = vld [vmem:[#allocation3 + $0x70] sm:$0xff]  ;;  %v195_v42 = vld [vmem:[#allocation8 + $0x18] sm:$0xff]  ;;  %v193_v46 = vld [vmem:[#allocation8 + $0x8] sm:$0xff] }
  0x1d   :  { %118 = vmatpush.msra.mxu0 %v99_v7  ;;  %469 = vmatpush.msra.mxu2 %v99_v7  ;;  %v82_v43 = vld [vmem:[#allocation3 + $0x38] sm:$0xff]  ;;  %v194_v45 = vld [vmem:[#allocation8 + $0x10] sm:$0xff]  ;;  %v192_v47 = vld [vmem:[#allocation8] sm:$0xff] }
  0x1e   :  { %215 = vmatpush.msra.mxu1 %v204_v27  ;;  %481 = vmatpush.msra.mxu3 %v204_v27  ;;  %v90_v44 = vld [vmem:[#allocation3 + $0x78] sm:$0xff]  ;;  %v500_v48 = vld [vmem:[%s750_s2] ss:$0 sm:$0xff] }
  0x1f   :  { %119 = vmatpush.msra.mxu0 %v98_v8  ;;  %470 = vmatpush.msra.mxu2 %v98_v8 }
  0x20   :  { %216 = vmatpush.msra.mxu1 %v203_v30  ;;  %482 = vmatpush.msra.mxu3 %v203_v30 }
  0x21   :  { %120 = vmatpush.msra.mxu0 %v97_v9  ;;  %471 = vmatpush.msra.mxu2 %v97_v9 }
  0x22   :  { %217 = vmatpush.msra.mxu1 %v202_v31  ;;  %483 = vmatpush.msra.mxu3 %v202_v31 }
  0x23   :  { %121 = vmatpush.msra.mxu0 %v96_v10  ;;  %472 = vmatpush.msra.mxu2 %v96_v10 }
  0x24   :  { %218 = vmatpush.msra.mxu1 %v201_v32  ;;  %484 = vmatpush.msra.mxu3 %v201_v32 }
  0x25   :  { %122 = vmatpush.msra.mxu0 %v95_v11  ;;  %473 = vmatpush.msra.mxu2 %v95_v11 }
  0x26   :  { %219 = vmatpush.msra.mxu1 %v200_v33  ;;  %485 = vmatpush.msra.mxu3 %v200_v33  ;;  %v666_v33 = vld [vmem:[%s752_s4] ss:$0 sm:$0xff] }
  0x27   :  { %123 = vmatpush.msra.mxu0 %v94_v12  ;;  %474 = vmatpush.msra.mxu2 %v94_v12 }
  0x28   :  { %220 = vmatpush.msra.mxu1 %v199_v36  ;;  %486 = vmatpush.msra.mxu3 %v199_v36  ;;  %v672_v36 = vld [vmem:[%s753_s5] ss:$0 sm:$0xff] }
  0x29   :  { %124 = vmatpush.msra.mxu0 %v93_v13  ;;  %475 = vmatpush.msra.mxu2 %v93_v13 }
  0x2a   :  { %221 = vmatpush.msra.mxu1 %v198_v37  ;;  %487 = vmatpush.msra.mxu3 %v198_v37 }
  0x2b   :  { %125 = vmatpush.msra.mxu0 %v92_v14  ;;  %476 = vmatpush.msra.mxu2 %v92_v14 }
  0x2c   :  { %222 = vmatpush.msra.mxu1 %v197_v38  ;;  %488 = vmatpush.msra.mxu3 %v197_v38 }
  0x2d   :  { %126 = vmatpush.msra.mxu0 %v91_v15  ;;  %477 = vmatpush.msra.mxu2 %v91_v15 }
  0x2e   :  { %127 = vmatmul.f32.vlgmr.msra.gmra.mxu0 %v75_v16  ;;  %151 = vmatmul.f32.vlgmr.msra.gmra.mxu2 %v83_v17 }
  0x2f   :  { %223 = vmatpush.msra.mxu1 %v196_v39  ;;  %489 = vmatpush.msra.mxu3 %v196_v39 }
  0x31   :  { %224 = vmatpush.msra.mxu1 %v195_v42  ;;  %490 = vmatpush.msra.mxu3 %v195_v42 }
  0x33   :  { %225 = vmatpush.msra.mxu1 %v194_v45  ;;  %491 = vmatpush.msra.mxu3 %v194_v45 }
  0x35   :  { %226 = vmatpush.msra.mxu1 %v193_v46  ;;  %492 = vmatpush.msra.mxu3 %v193_v46 }
  0x36   :  { %130 = vmatmul.f32.gmra.mxu0 %v76_v18  ;;  %154 = vmatmul.f32.gmra.mxu2 %v84_v19 }
  0x37   :  { %227 = vmatpush.msra.mxu1 %v192_v47  ;;  %493 = vmatpush.msra.mxu3 %v192_v47 }
  0x3e   :  { %133 = vmatmul.f32.gmra.mxu0 %v77_v20  ;;  %157 = vmatmul.f32.gmra.mxu2 %v85_v21 }
  0x46   :  { %136 = vmatmul.f32.gmra.mxu0 %v78_v22  ;;  %160 = vmatmul.f32.gmra.mxu2 %v86_v23 }
  0x4e   :  { %139 = vmatmul.f32.gmra.mxu0 %v79_v28  ;;  %163 = vmatmul.f32.gmra.mxu2 %v87_v29 }
  0x56   :  { %142 = vmatmul.f32.gmra.mxu0 %v80_v34  ;;  %166 = vmatmul.f32.gmra.mxu2 %v88_v35 }
  0x5e   :  { %145 = vmatmul.f32.gmra.mxu0 %v81_v40  ;;  %169 = vmatmul.f32.gmra.mxu2 %v89_v41 }
  0x66   :  { %148 = vmatmul.f32.gmra.mxu0 %v82_v43  ;;  %172 = vmatmul.f32.gmra.mxu2 %v90_v44 }
  0xab   :  { %v128_v49 = vpop.f32.mrf.mxu0 }
  0xac   :  { %v129_v50 = vadd.f32 %v500_v48, %v128_v49 }
  0xae   :  { %v176_v51 = vmax.f32 %v129_v50, 0.0 }
  0xb0   :  { %228 = vmatmul.f32.vlgmr.msra.gmra.mxu1 %v176_v51 }
  0xb1   :  { %v152_v52 = vpop.f32.mrf.mxu2 }
  0xb2   :  { %v153_v53 = vadd.f32 %v500_v48, %v152_v52 }
  0xb3   :  { %v131_v54 = vpop.f32.mrf.mxu0 }
  0xb4   :  { %v184_v55 = vmax.f32 %v153_v53, 0.0  ;;  %v132_v56 = vadd.f32 %v500_v48, %v131_v54 }
  0xb6   :  { %v177_v57 = vmax.f32 %v132_v56, 0.0  ;;  %252 = vmatmul.f32.vlgmr.msra.gmra.mxu3 %v184_v55 }
  0xb8   :  { %231 = vmatmul.f32.gmra.mxu1 %v177_v57 }
  0xb9   :  { %v155_v58 = vpop.f32.mrf.mxu2 }
  0xba   :  { %v156_v59 = vadd.f32 %v500_v48, %v155_v58 }
  0xbb   :  { %v134_v60 = vpop.f32.mrf.mxu0 }
  0xbc   :  { %v185_v61 = vmax.f32 %v156_v59, 0.0  ;;  %v135_v62 = vadd.f32 %v500_v48, %v134_v60 }
  0xbe   :  { %v178_v63 = vmax.f32 %v135_v62, 0.0  ;;  %255 = vmatmul.f32.gmra.mxu3 %v185_v61 }
  0xc0   :  { %234 = vmatmul.f32.gmra.mxu1 %v178_v63 }
  0xc1   :  { %v158_v0 = vpop.f32.mrf.mxu2 }
  0xc2   :  { %v159_v1 = vadd.f32 %v500_v48, %v158_v0 }
  0xc3   :  { %v137_v2 = vpop.f32.mrf.mxu0 }
  0xc4   :  { %v186_v3 = vmax.f32 %v159_v1, 0.0  ;;  %v138_v4 = vadd.f32 %v500_v48, %v137_v2 }
  0xc6   :  { %v179_v5 = vmax.f32 %v138_v4, 0.0  ;;  %258 = vmatmul.f32.gmra.mxu3 %v186_v3 }
  0xc8   :  { %237 = vmatmul.f32.gmra.mxu1 %v179_v5 }
  0xc9   :  { %v161_v6 = vpop.f32.mrf.mxu2 }
  0xca   :  { %v162_v7 = vadd.f32 %v500_v48, %v161_v6 }
  0xcb   :  { %v140_v8 = vpop.f32.mrf.mxu0 }
  0xcc   :  { %v187_v9 = vmax.f32 %v162_v7, 0.0  ;;  %v141_v10 = vadd.f32 %v500_v48, %v140_v8 }
  0xce   :  { %v180_v11 = vmax.f32 %v141_v10, 0.0  ;;  %261 = vmatmul.f32.gmra.mxu3 %v187_v9 }
  0xd0   :  { %240 = vmatmul.f32.gmra.mxu1 %v180_v11 }
  0xd1   :  { %v164_v12 = vpop.f32.mrf.mxu2 }
  0xd2   :  { %v165_v13 = vadd.f32 %v500_v48, %v164_v12 }
  0xd3   :  { %v143_v14 = vpop.f32.mrf.mxu0 }
  0xd4   :  { %v188_v15 = vmax.f32 %v165_v13, 0.0  ;;  %v144_v16 = vadd.f32 %v500_v48, %v143_v14 }
  0xd6   :  { %v181_v17 = vmax.f32 %v144_v16, 0.0  ;;  %264 = vmatmul.f32.gmra.mxu3 %v188_v15 }
  0xd8   :  { %243 = vmatmul.f32.gmra.mxu1 %v181_v17 }
  0xd9   :  { %v167_v18 = vpop.f32.mrf.mxu2 }
  0xda   :  { %v168_v19 = vadd.f32 %v500_v48, %v167_v18 }
  0xdb   :  { %v146_v20 = vpop.f32.mrf.mxu0 }
  0xdc   :  { %v189_v21 = vmax.f32 %v168_v19, 0.0  ;;  %v147_v22 = vadd.f32 %v500_v48, %v146_v20 }
  0xde   :  { %v182_v23 = vmax.f32 %v147_v22, 0.0  ;;  %267 = vmatmul.f32.gmra.mxu3 %v189_v21 }
  0xe0   :  { %246 = vmatmul.f32.gmra.mxu1 %v182_v23 }
  0xe1   :  { %v170_v24 = vpop.f32.mrf.mxu2 }
  0xe2   :  { %v171_v25 = vadd.f32 %v500_v48, %v170_v24 }
  0xe3   :  { %v149_v26 = vpop.f32.mrf.mxu0 }
  0xe4   :  { %v190_v27 = vmax.f32 %v171_v25, 0.0  ;;  %v150_v28 = vadd.f32 %v500_v48, %v149_v26 }
  0xe6   :  { %v183_v29 = vmax.f32 %v150_v28, 0.0  ;;  %270 = vmatmul.f32.gmra.mxu3 %v190_v27 }
  0xe8   :  { %249 = vmatmul.f32.gmra.mxu1 %v183_v29 }
  0xe9   :  { %v173_v30 = vpop.f32.mrf.mxu2 }
  0xea   :  { %v174_v31 = vadd.f32 %v500_v48, %v173_v30 }
  0xec   :  { %v191_v32 = vmax.f32 %v174_v31, 0.0 }
  0xee   :  { %273 = vmatmul.f32.gmra.mxu3 %v191_v32 }
 0x12d   :  { %v229_v34 = vpop.f32.mrf.mxu1 }
 0x12e   :  { %v230_v35 = vadd.f32 %v666_v33, %v229_v34 }
 0x130   :  { %v277_v37 = vmax.f32 %v230_v35, 0.0 }
 0x132   :  { %v297_v38 = vmul.f32 %v672_v36, %v277_v37 }
 0x134   :  { %313 = vadd.xlane.f32.xlu0 %v297_v38 }
 0x135   :  { %v232_v39 = vpop.f32.mrf.mxu1 }
 0x136   :  { %v233_v40 = vadd.f32 %v666_v33, %v232_v39 }
 0x138   :  { %v278_v41 = vmax.f32 %v233_v40, 0.0 }
 0x139   :  { %v253_v42 = vpop.f32.mrf.mxu3 }
 0x13a   :  { %v254_v43 = vadd.f32 %v666_v33, %v253_v42  ;;  %v298_v44 = vmul.f32 %v672_v36, %v278_v41 }
 0x13c   :  { %v285_v45 = vmax.f32 %v254_v43, 0.0  ;;  %315 = vadd.xlane.f32.xlu0 %v298_v44  ;;  %v379_v43 = vlaneseq }
 0x13d   :  { %v235_v46 = vpop.f32.mrf.mxu1 }
 0x13e   :  { %v236_v47 = vadd.f32 %v666_v33, %v235_v46  ;;  %v305_v48 = vmul.f32 %v672_v36, %v285_v45  ;;  %v705_v45 = vand.u32 127, %v379_v43 }
 0x140   :  { %v279_v49 = vmax.f32 %v236_v47, 0.0  ;;  %329 = vadd.xlane.f32.xlu2 %v305_v48  ;;  %v382_v47 = vadd.s32 4294967288, %v705_v45  ;;  %v386_v48 = vadd.s32 4294967280, %v705_v45 }
 0x141   :  { %v256_v50 = vpop.f32.mrf.mxu3 }
 0x142   :  { %v257_v51 = vadd.f32 %v666_v33, %v256_v50  ;;  %v299_v52 = vmul.f32 %v672_v36, %v279_v49 }
 0x144   :  { %v286_v53 = vmax.f32 %v257_v51, 0.0  ;;  %317 = vadd.xlane.f32.xlu1 %v299_v52  ;;  %v390_v52 = vadd.s32 4294967272, %v705_v45 }
 0x145   :  { %v238_v54 = vpop.f32.mrf.mxu1 }
 0x146   :  { %v239_v55 = vadd.f32 %v666_v33, %v238_v54  ;;  %v306_v56 = vmul.f32 %v672_v36, %v286_v53 }
 0x148   :  { %v280_v57 = vmax.f32 %v239_v55, 0.0  ;;  %331 = vadd.xlane.f32.xlu0 %v306_v56  ;;  %v394_v55 = vadd.s32 4294967264, %v705_v45 }
 0x149   :  { %v259_v58 = vpop.f32.mrf.mxu3 }
 0x14a   :  { %v260_v59 = vadd.f32 %v666_v33, %v259_v58  ;;  %v300_v60 = vmul.f32 %v672_v36, %v280_v57  ;;  %v398_v58 = vadd.s32 4294967256, %v705_v45 }
 0x14c   :  { %319 = vadd.xlane.f32.xlu1 %v300_v60  ;;  %v287_v62 = vmax.f32 %v260_v59, 0.0 }
 0x14d   :  { %v241_v61 = vpop.f32.mrf.mxu1 }
 0x14e   :  { %v242_v63 = vadd.f32 %v666_v33, %v241_v61  ;;  %v307_v3 = vmul.f32 %v672_v36, %v287_v62  ;;  %v402_v61 = vadd.s32 4294967248, %v705_v45 }
 0x150   :  { %v281_v0 = vmax.f32 %v242_v63, 0.0 }
 0x151   :  { %v262_v1 = vpop.f32.mrf.mxu3 }
 0x152   :  { %v301_v2 = vmul.f32 %v672_v36, %v281_v0  ;;  %v263_v8 = vadd.f32 %v666_v33, %v262_v1  ;;  %v410_v0 = vadd.s32 4294967232, %v705_v45 }
 0x154   :  { %321 = vadd.xlane.f32.xlu2 %v301_v2  ;;  %333 = vadd.xlane.f32.xlu1 %v307_v3  ;;  %v288_v11 = vmax.f32 %v263_v8, 0.0  ;;  %v414_v2 = vadd.s32 4294967224, %v705_v45  ;;  %v406_v8 = vadd.s32 4294967240, %v705_v45 }
 0x155   :  { %v244_v4 = vpop.f32.mrf.mxu1 }
 0x156   :  { %v245_v5 = vadd.f32 %v666_v33, %v244_v4  ;;  %v308_v16 = vmul.f32 %v672_v36, %v288_v11 }
 0x158   :  { %v282_v6 = vmax.f32 %v245_v5, 0.0  ;;  %v418_v5 = vadd.s32 4294967216, %v705_v45 }
 0x159   :  { %v265_v7 = vpop.f32.mrf.mxu3 }
 0x15a   :  { %v302_v9 = vmul.f32 %v672_v36, %v282_v6  ;;  %v266_v15 = vadd.f32 %v666_v33, %v265_v7 }
 0x15c   :  { %323 = vadd.xlane.f32.xlu2 %v302_v9  ;;  %v289_v19 = vmax.f32 %v266_v15, 0.0 }
 0x15d   :  { %v247_v10 = vpop.f32.mrf.mxu1 }
 0x15e   :  { %v248_v12 = vadd.f32 %v666_v33, %v247_v10  ;;  %v309_v26 = vmul.f32 %v672_v36, %v289_v19 }
 0x160   :  { %v283_v13 = vmax.f32 %v248_v12, 0.0 }
 0x161   :  { %v268_v14 = vpop.f32.mrf.mxu3 }
 0x162   :  { %v303_v17 = vmul.f32 %v672_v36, %v283_v13  ;;  %v269_v23 = vadd.f32 %v666_v33, %v268_v14 }
 0x164   :  { %335 = vadd.xlane.f32.xlu2 %v308_v16  ;;  %325 = vadd.xlane.f32.xlu0 %v303_v17  ;;  %v290_v28 = vmax.f32 %v269_v23, 0.0 }
 0x165   :  { %v250_v18 = vpop.f32.mrf.mxu1 }
 0x166   :  { %v251_v20 = vadd.f32 %v666_v33, %v250_v18  ;;  %v310_v32 = vmul.f32 %v672_v36, %v290_v28  ;;  %v422_v18 = vadd.s32 4294967208, %v705_v45 }
 0x168   :  { %v284_v21 = vmax.f32 %v251_v20, 0.0 }
 0x169   :  { %v271_v22 = vpop.f32.mrf.mxu3 }
 0x16a   :  { %v272_v24 = vadd.f32 %v666_v33, %v271_v22  ;;  %v304_v25 = vmul.f32 %v672_v36, %v284_v21 }
 0x16c   :  { %v291_v27 = vmax.f32 %v272_v24, 0.0  ;;  %327 = vadd.xlane.f32.xlu1 %v304_v25  ;;  %337 = vadd.xlane.f32.xlu0 %v309_v26 }
 0x16e   :  { %v311_v29 = vmul.f32 %v672_v36, %v291_v27  ;;  %v426_v27 = vadd.s32 4294967200, %v705_v45 }
 0x170   :  { %341 = vadd.xlane.f32.xlu2 %v311_v29 }
 0x171   :  { %v274_v30 = vpop.f32.mrf.mxu3 }
 0x172   :  { %v275_v31 = vadd.f32 %v666_v33, %v274_v30  ;;  %v710_v33 = vstv %s754_s6  ;;  %s610_s6 = smov [#allocation9]  }
 0x173   :  { %s449_s20 = sshll.u32 %s610_s6, 4  ;;  %s450_s20 = int_to_ptr.vmem [resolvable:$true] %s449_s20 }
 0x174   :  { %v292_v34 = vmax.f32 %v275_v31, 0.0  ;;  %339 = vadd.xlane.f32.xlu1 %v310_v32 }
 0x176   :  { %v312_v35 = vmul.f32 %v672_v36, %v292_v34 }
 0x178   :  { %343 = vadd.xlane.f32.xlu0 %v312_v35  ;;  %v430_v35 = vadd.s32 4294967192, %v705_v45 }
 0x1a7   :  { %v314_v37 = vpop.xlane.xlu0 %313 }
 0x1a8   :  { %v347_v51 = vadd.f32 %v710_v33, %v314_v37 }
 0x1aa   :  { %v381_v63 = vperm.slane %v347_v51, %v705_v45 }
 0x1af   :  { %v316_v40 = vpop.xlane.xlu0 %315 }
 0x1b0   :  { %v348_v36 = vadd.f32 %v710_v33, %v316_v40 }
 0x1b2   :  { %v383_v57 = vperm.slane %v348_v36, %v382_v47 }
 0x1b3   :  { %v330_v38 = vpop.xlane.xlu2 %329 }
 0x1b4   :  { %v385_v4 = vsel %vm384_vm0, %v383_v57, %v381_v63  ;;  %v355_v9 = vadd.f32 %v710_v33, %v330_v38 }
 0x1b6   :  { %v411_v23 = vperm.slane %v355_v9, %v410_v0 }
 0x1b7   :  { %v318_v39 = vpop.xlane.xlu1 %317 }
 0x1b8   :  { %v349_v49 = vadd.f32 %v710_v33, %v318_v39 }
 0x1ba   :  { %v387_v60 = vperm.slane %v349_v49, %v386_v48 }
 0x1bb   :  { %v332_v44 = vpop.xlane.xlu0 %331 }
 0x1bc   :  { %v389_v10 = vsel %vm388_vm1, %v387_v60, %v385_v4  ;;  %v356_v13 = vadd.f32 %v710_v33, %v332_v44 }
 0x1be   :  { %v415_v25 = vperm.slane %v356_v13, %v414_v2 }
 0x1bf   :  { %v320_v42 = vpop.xlane.xlu1 %319 }
 0x1c0   :  { %v350_v53 = vadd.f32 %v710_v33, %v320_v42  ;;  %v434_v42 = vadd.s32 4294967184, %v705_v45 }
 0x1c2   :  { %v391_v1 = vperm.slane %v350_v53, %v390_v52 }
 0x1c4   :  { %v393_v14 = vsel %vm392_vm2, %v391_v1, %v389_v10 }
 0x1c7   :  { %v322_v41 = vpop.xlane.xlu2 %321  ;;  %v334_v50 = vpop.xlane.xlu1 %333 }
 0x1c8   :  { %v351_v56 = vadd.f32 %v710_v33, %v322_v41  ;;  %v357_v17 = vadd.f32 %v710_v33, %v334_v50 }
 0x1ca   :  { %v395_v3 = vperm.slane %v351_v56, %v394_v55  ;;  %v419_v28 = vperm.slane %v357_v17, %v418_v5 }
 0x1cc   :  { %v397_v16 = vsel %vm396_vm3, %v395_v3, %v393_v14 }
 0x1cf   :  { %v324_v46 = vpop.xlane.xlu2 %323 }
 0x1d0   :  { %v352_v59 = vadd.f32 %v710_v33, %v324_v46  ;;  %v438_v46 = vadd.s32 4294967176, %v705_v45 }
 0x1d2   :  { %v399_v6 = vperm.slane %v352_v59, %v398_v58 }
 0x1d4   :  { %v401_v19 = vsel %vm400_vm4, %v399_v6, %v397_v16 }
 0x1d7   :  { %v326_v54 = vpop.xlane.xlu0 %325  ;;  %v336_v7 = vpop.xlane.xlu2 %335 }
 0x1d8   :  { %v353_v62 = vadd.f32 %v710_v33, %v326_v54  ;;  %v358_v20 = vadd.f32 %v710_v33, %v336_v7 }
 0x1da   :  { %v403_v11 = vperm.slane %v353_v62, %v402_v61  ;;  %v423_v31 = vperm.slane %v358_v20, %v422_v18 }
 0x1dc   :  { %v405_v24 = vsel %vm404_vm5, %v403_v11, %v401_v19 }
 0x1df   :  { %v328_v12 = vpop.xlane.xlu1 %327  ;;  %v338_v22 = vpop.xlane.xlu0 %337 }
 0x1e0   :  { %v354_v15 = vadd.f32 %v710_v33, %v328_v12  ;;  %v359_v30 = vadd.f32 %v710_v33, %v338_v22 }
 0x1e2   :  { %v407_v21 = vperm.slane %v354_v15, %v406_v8  ;;  %v427_v41 = vperm.slane %v359_v30, %v426_v27 }
 0x1e3   :  { %v342_v34 = vpop.xlane.xlu2 %341 }
 0x1e4   :  { %v409_v26 = vsel %vm408_vm6, %v407_v21, %v405_v24  ;;  %v361_v43 = vadd.f32 %v710_v33, %v342_v34 }
 0x1e5   :  { %v413_v29 = vsel %vm412_vm7, %v411_v23, %v409_v26 }
 0x1e6   :  { %v417_v32 = vsel %vm416_vm8, %v415_v25, %v413_v29  ;;  %v435_v50 = vperm.slane %v361_v43, %v434_v42 }
 0x1e7   :  { %v421_v37 = vsel %vm420_vm9, %v419_v28, %v417_v32  ;;  %v340_v38 = vpop.xlane.xlu1 %339 }
 0x1e8   :  { %v425_v39 = vsel %vm424_vm10, %v423_v31, %v421_v37  ;;  %v360_v40 = vadd.f32 %v710_v33, %v340_v38 }
 0x1e9   :  { %v429_v47 = vsel %vm428_vm11, %v427_v41, %v425_v39 }
 0x1ea   :  { %v431_v44 = vperm.slane %v360_v40, %v430_v35 }
 0x1eb   :  { %v344_v36 = vpop.xlane.xlu0 %343 }
 0x1ec   :  { %v433_v48 = vsel %vm432_vm12, %v431_v44, %v429_v47  ;;  %v362_v49 = vadd.f32 %v710_v33, %v344_v36 }
 0x1ed   :  { %v437_v52 = vsel %vm436_vm13, %v435_v50, %v433_v48 }
 0x1ee   :  { %v439_v51 = vperm.slane %v362_v49, %v438_v46 }
 0x1f0   :  { %v441_v53 = vsel %vm440_vm14, %v439_v51, %v437_v52 }
 0x1f1   :  { %443 = vst [vmem:[#allocation9] sm:$0x1] %v441_v53 }
 0x1f2   :  { %454 = dma.vmem_to_hbm [thread:$0]  %s450_s20, 16, %s452_s23, [#allocation5]  }
 0x1f3   :  { %603 = dma.done.wait [#allocation5], 16  }
 0x1f4   :  { %604 = vsyncadd [#allocation5], 4294967280 }
 0x1f5   :  { %459 = vsyncpa [#allocation4], 1 }
 0x1f6   :  { %460 = vsyncpa [#allocation7], 1 }
 0x1f7   :  { %461 = vsyncpa [#allocation5], 1 }

</bundles_post_ra>
